<compile_context>
chip_gen: v6e
topology: v6e:2x2x1
jax: 0.10.0
libtpu: 0.0.40
codegen_flags: <defaults>
</compile_context>

<pallas_src>
import functools

import jax
import jax.numpy as jnp
from jax.experimental import pallas as pl
from jax.experimental.pallas import tpu as pltpu


# ----------------------------- small utilities ------------------------------
def _pair(v):
    return tuple(v) if isinstance(v, (tuple, list)) else (v, v)


def _quadruple(v):
    return tuple(v) if isinstance(v, (tuple, list)) else (v, v, v, v)


def _median_pool_padding(H, W, k, stride, padding, same):
    """Replicates MedianPool2d._padding -> (left, right, top, bottom)."""
    kh, kw = k
    sh, sw = stride
    if same:
        ph = max(kh - sh, 0) if H % sh == 0 else max(kh - (H % sh), 0)
        pw = max(kw - sw, 0) if W % sw == 0 else max(kw - (W % sw), 0)
        p_l = pw // 2
        p_r = pw - p_l
        p_t = ph // 2
        p_b = ph - p_t
        return p_l, p_r, p_t, p_b
    return padding


def _pick_plane_batch(nc, per_plane_bytes, budget_bytes=512 * 1024):
    """Largest divisor of nc whose per-step block bytes fit the budget."""
    best = 1
    for b in range(1, nc + 1):
        if nc % b == 0 and b * per_plane_bytes <= budget_bytes:
            best = b
    return best


# --------------------------- median networks (VPU) ---------------------------
# NOTE: NaN ordering through jnp.minimum/maximum may differ from
# torch.median's NaN propagation in edge cases.
def _sort2(a, b):
    return jnp.minimum(a, b), jnp.maximum(a, b)


def _median3(a, b, c):
    lo, hi = _sort2(a, b)
    return jnp.maximum(lo, jnp.minimum(hi, c))


# --------------------------------- kernels ------------------------------------
def _median3x3_kernel(x_ref, o_ref):
    """Separable vertical-first 3x3 median (classic max-of-mins /
    median-of-medians / min-of-maxes decomposition), ~18 min/max ops.

    x_ref: (B, Hp, Wp) reflect-padded planes in VMEM.
    o_ref: (B, Ho, Wo) dense (stride-1) median map, Ho = Hp-2, Wo = Wp-2.
    """
    Ho = o_ref.shape[1]
    Wo = o_ref.shape[2]

    # Vertical: three sublane-shifted row planes at full padded width.
    r0 = x_ref[:, 0:Ho, :]
    r1 = x_ref[:, 1:Ho + 1, :]
    r2 = x_ref[:, 2:Ho + 2, :]

    # Sort the vertical triple once per horizontal position (shared across
    # the three horizontally adjacent windows): 6 min/max ops.
    a0, b0 = _sort2(r0, r1)
    b1, hi = _sort2(b0, r2)
    lo, md = _sort2(a0, b1)

    # Horizontal: combine the three lane-shifted views of lo / md / hi.
    a = jnp.maximum(jnp.maximum(lo[:, :, 0:Wo], lo[:, :, 1:Wo + 1]),
                    lo[:, :, 2:Wo + 2])
    c = jnp.minimum(jnp.minimum(hi[:, :, 0:Wo], hi[:, :, 1:Wo + 1]),
                    hi[:, :, 2:Wo + 2])
    b = _median3(md[:, :, 0:Wo], md[:, :, 1:Wo + 1], md[:, :, 2:Wo + 2])

    o_ref[...] = _median3(a, b, c)


def _median_pool_general_kernel(x_ref, o_ref, *, kh, kw):
    """Fallback for arbitrary window sizes: odd-even transposition network,
    lower-middle pick (matches torch.median for odd and even K)."""
    Ho = o_ref.shape[1]
    Wo = o_ref.shape[2]
    wins = [x_ref[:, di:di + Ho, dj:dj + Wo]
            for di in range(kh) for dj in range(kw)]
    K = len(wins)
    for it in range(K):
        for i in range(it % 2, K - 1, 2):
            wins[i], wins[i + 1] = _sort2(wins[i], wins[i + 1])
    o_ref[...] = wins[(K - 1) // 2]


# -------------------------------- wrapper -------------------------------------
@functools.partial(jax.jit,
                   static_argnames=("kernel_size", "stride", "padding", "same"))
def median_pool2d(x, kernel_size=3, stride=1, padding=0, same=False):
    """Forward pass of MedianPool2d (PyTorch semantics), NCHW in / NCHW out."""
    k = _pair(kernel_size)
    st = _pair(stride)
    pad4 = _quadruple(padding)
    N, C, H, W = x.shape
    kh, kw = k
    sh, sw = st
    p_l, p_r, p_t, p_b = _median_pool_padding(H, W, k, st, pad4, same)

    # Reflect pad (== F.pad(mode='reflect')) in the *input dtype* (no f32
    # upcast) and flatten (N, C) so the grid iterates over independent planes.
    # Under jit + allow_input_fusion the pad can fuse into the kernel's input
    # DMA instead of a separate HBM pass.
    xp = jnp.pad(x, ((0, 0), (0, 0), (p_t, p_b), (p_l, p_r)), mode="reflect")
    Hp, Wp = int(xp.shape[2]), int(xp.shape[3])
    NC = N * C
    xp = xp.reshape(NC, Hp, Wp)

    Ho1 = Hp - kh + 1   # dense (stride-1) output extent
    Wo1 = Wp - kw + 1

    itemsize = jnp.dtype(x.dtype).itemsize
    per_plane = (Hp * Wp + Ho1 * Wo1) * itemsize
    B = _pick_plane_batch(NC, per_plane)
    # TODO(synk): if B == 1 and a single plane is still tens of MiB, tile H
    # into row strips with a (kh-1)-row halo instead of whole planes.

    if (kh, kw) == (3, 3):
        kernel = _median3x3_kernel
    else:
        kernel = functools.partial(_median_pool_general_kernel, kh=kh, kw=kw)

    dense = pl.pallas_call(
        kernel,
        out_shape=jax.ShapeDtypeStruct((NC, Ho1, Wo1), x.dtype),
        grid=(NC // B,),
        in_specs=[pl.BlockSpec((B, Hp, Wp), lambda g: (g, 0, 0))],
        out_specs=pl.BlockSpec((B, Ho1, Wo1), lambda g: (g, 0, 0)),
        compiler_params=pltpu.CompilerParams(
            dimension_semantics=("parallel",),
            allow_input_fusion=[True]),
    )(xp)

    # Glue: stride subsampling (no-op for the default stride=1) and back to
    # NCHW.  TODO(synk): for stride > 1, compute only the strided rows/cols
    # in-kernel (strided out BlockSpec) instead of slicing the dense map.
    out = dense.reshape(N, C, Ho1, Wo1)
    if sh != 1 or sw != 1:
        out = out[:, :, ::sh, ::sw]
    return out


# ---------------------------- pure-JAX reference ------------------------------
def reference_median_pool2d(x, kernel_size=3, stride=1, padding=0, same=False):
    k = _pair(kernel_size)
    st = _pair(stride)
    pad4 = _quadruple(padding)
    N, C, H, W = x.shape
    kh, kw = k
    sh, sw = st
    p_l, p_r, p_t, p_b = _median_pool_padding(H, W, k, st, pad4, same)
    xp = jnp.pad(x, ((0, 0), (0, 0), (p_t, p_b), (p_l, p_r)), mode="reflect")
    Hp, Wp = int(xp.shape[2]), int(xp.shape[3])
    Ho = (Hp - kh) // sh + 1
    Wo = (Wp - kw) // sw + 1
    wins = []
    for di in range(kh):
        for dj in range(kw):
            wins.append(xp[:, :,
                           di:di + sh * (Ho - 1) + 1:sh,
                           dj:dj + sw * (Wo - 1) + 1:sw])
    stacked = jnp.stack(wins, axis=-1)                   # (N, C, Ho, Wo, K)
    srt = jnp.sort(stacked, axis=-1)
    return srt[..., (kh * kw - 1) // 2]                  # torch lower-middle


def _check(name, got, want):
    ok = (got.shape == want.shape) and bool(jnp.array_equal(got, want))
    if not ok:
        err = float(jnp.max(jnp.abs(got.astype(jnp.float32)
                                    - want.astype(jnp.float32))))
        raise AssertionError(
            f"{name} mismatch: shapes {got.shape} vs {want.shape}, "
            f"max abs err = {err}")


# ----------------------------------- main -------------------------------------
if __name__ == "__main__":
    key = jax.random.PRNGKey(0)
    N, C, H, W = 2, 4, 16, 16
    x = jax.random.normal(key, (N, C, H, W), jnp.float32)

    # Default config: kernel_size=3, stride=1, padding=0, same=False.
    out = jax.block_until_ready(median_pool2d(x))
    assert out.shape == (N, C, H - 2, W - 2), out.shape
    assert out.dtype == x.dtype, out.dtype
    _check("default-config", out, reference_median_pool2d(x))

    # 'same' padding exercises the reflect-pad (+ input-fusion) path.
    out_same = jax.block_until_ready(median_pool2d(x, same=True))
    assert out_same.shape == (N, C, H, W), out_same.shape
    _check("same-padding", out_same, reference_median_pool2d(x, same=True))

    # bf16 input exercises the native-dtype path (median stays exact in bf16).
    xb = x.astype(jnp.bfloat16)
    out_bf = jax.block_until_ready(median_pool2d(xb))
    assert out_bf.dtype == jnp.bfloat16, out_bf.dtype
    _check("bf16", out_bf, reference_median_pool2d(xb))

    print("KERNEL_OK")
</pallas_src>

<mosaic_0001>
module attributes {stable_mosaic.version = 11 : i64} {
  func.func @_median3x3_kernel(%arg0: i32, %arg1: memref<8x16x16xf32, #tpu.memory_space<vmem>>, %arg2: memref<8x14x14xf32, #tpu.memory_space<vmem>>) attributes {dimension_semantics = [#tpu.dimension_semantics<parallel>], iteration_bounds = array<i64: 1>, scalar_prefetch = 0 : i64, scratch_operands = 0 : i64, tpu.core_type = #tpu.core_type<tc>, window_params = [{transform_indices = @transform_0, window_bounds = array<i64: 8, 16, 16>}, {transform_indices = @transform_1, window_bounds = array<i64: 8, 14, 14>}]} {
    %c0 = arith.constant 0 : index
    %c0_0 = arith.constant 0 : index
    %c0_1 = arith.constant 0 : index
    %0 = vector.load %arg1[%c0, %c0_0, %c0_1] : memref<8x16x16xf32, #tpu.memory_space<vmem>>, vector<8x14x16xf32>
    %c0_2 = arith.constant 0 : index
    %c1 = arith.constant 1 : index
    %c0_3 = arith.constant 0 : index
    %1 = vector.load %arg1[%c0_2, %c1, %c0_3] : memref<8x16x16xf32, #tpu.memory_space<vmem>>, vector<8x14x16xf32>
    %c0_4 = arith.constant 0 : index
    %c2 = arith.constant 2 : index
    %c0_5 = arith.constant 0 : index
    %2 = vector.load %arg1[%c0_4, %c2, %c0_5] : memref<8x16x16xf32, #tpu.memory_space<vmem>>, vector<8x14x16xf32>
    %3 = arith.minimumf %0, %1 : vector<8x14x16xf32>
    %4 = arith.maximumf %0, %1 : vector<8x14x16xf32>
    %5 = arith.minimumf %4, %2 : vector<8x14x16xf32>
    %6 = arith.maximumf %4, %2 : vector<8x14x16xf32>
    %7 = arith.minimumf %3, %5 : vector<8x14x16xf32>
    %8 = arith.maximumf %3, %5 : vector<8x14x16xf32>
    %9 = vector.extract_strided_slice %7 {offsets = [0, 0, 0], sizes = [8, 14, 14], strides = [1, 1, 1]} : vector<8x14x16xf32> to vector<8x14x14xf32>
    %10 = vector.extract_strided_slice %7 {offsets = [0, 0, 1], sizes = [8, 14, 14], strides = [1, 1, 1]} : vector<8x14x16xf32> to vector<8x14x14xf32>
    %11 = arith.maximumf %9, %10 : vector<8x14x14xf32>
    %12 = vector.extract_strided_slice %7 {offsets = [0, 0, 2], sizes = [8, 14, 14], strides = [1, 1, 1]} : vector<8x14x16xf32> to vector<8x14x14xf32>
    %13 = arith.maximumf %11, %12 : vector<8x14x14xf32>
    %14 = vector.extract_strided_slice %6 {offsets = [0, 0, 0], sizes = [8, 14, 14], strides = [1, 1, 1]} : vector<8x14x16xf32> to vector<8x14x14xf32>
    %15 = vector.extract_strided_slice %6 {offsets = [0, 0, 1], sizes = [8, 14, 14], strides = [1, 1, 1]} : vector<8x14x16xf32> to vector<8x14x14xf32>
    %16 = arith.minimumf %14, %15 : vector<8x14x14xf32>
    %17 = vector.extract_strided_slice %6 {offsets = [0, 0, 2], sizes = [8, 14, 14], strides = [1, 1, 1]} : vector<8x14x16xf32> to vector<8x14x14xf32>
    %18 = arith.minimumf %16, %17 : vector<8x14x14xf32>
    %19 = vector.extract_strided_slice %8 {offsets = [0, 0, 0], sizes = [8, 14, 14], strides = [1, 1, 1]} : vector<8x14x16xf32> to vector<8x14x14xf32>
    %20 = vector.extract_strided_slice %8 {offsets = [0, 0, 1], sizes = [8, 14, 14], strides = [1, 1, 1]} : vector<8x14x16xf32> to vector<8x14x14xf32>
    %21 = vector.extract_strided_slice %8 {offsets = [0, 0, 2], sizes = [8, 14, 14], strides = [1, 1, 1]} : vector<8x14x16xf32> to vector<8x14x14xf32>
    %22 = arith.minimumf %19, %20 : vector<8x14x14xf32>
    %23 = arith.maximumf %19, %20 : vector<8x14x14xf32>
    %24 = arith.minimumf %23, %21 : vector<8x14x14xf32>
    %25 = arith.maximumf %22, %24 : vector<8x14x14xf32>
    %26 = arith.minimumf %13, %25 : vector<8x14x14xf32>
    %27 = arith.maximumf %13, %25 : vector<8x14x14xf32>
    %28 = arith.minimumf %27, %18 : vector<8x14x14xf32>
    %29 = arith.maximumf %26, %28 : vector<8x14x14xf32>
    %c0_6 = arith.constant 0 : index
    %c0_7 = arith.constant 0 : index
    %c0_8 = arith.constant 0 : index
    %30 = vector.load %arg2[%c0_6, %c0_7, %c0_8] : memref<8x14x14xf32, #tpu.memory_space<vmem>>, vector<8x14x14xf32>
    tpu.vector_store %arg2[%c0_6, %c0_7, %c0_8], %29 {strides = array<i32>} : memref<8x14x14xf32, #tpu.memory_space<vmem>>, vector<8x14x14xf32>,
    return
  }
  func.func @transform_0(%arg0: i32) -> (i32, i32, i32) {
    %c0_i32 = arith.constant 0 : i32
    %c0_i32_0 = arith.constant 0 : i32
    %c0_i32_1 = arith.constant 0 : i32
    return %arg0, %c0_i32, %c0_i32_0 : i32, i32, i32
  }
  func.func @transform_1(%arg0: i32) -> (i32, i32, i32) {
    %c0_i32 = arith.constant 0 : i32
    %c0_i32_0 = arith.constant 0 : i32
    %c0_i32_1 = arith.constant 0 : i32
    return %arg0, %c0_i32, %c0_i32_0 : i32, i32, i32
  }
}

</mosaic_0001>

<bundles_post_ra>
// kernel: median_pool2d.1
= control target key start
LH: loop header
LB: loop body
LE: loop exit
PB: predicated region body
PF: predicated region fallthrough
CT: control target
= control target key end

     0   :  { %6 = vsyncpa [#allocation3], 0  ;;  %s744_s6 = smov [#allocation2]   ;;  %s1484_s0 = inlined_call_operand.hbm [shape: f32[8,16,16], index: 0, kind: input, shape index: {}]   ;;  %s1485_s1 = inlined_call_operand.vmem [shape: f32[8,14,14], index: 1, kind: output, shape index: {}]  }
   0x1   :  { %s12_s7 = sshll.u32 %s744_s6, 4  ;;  %s13_s7 = int_to_ptr.vmem [resolvable:$true] %s12_s7 }
   0x2   :  { %s730_s8 = scalar_lea.vmem %s13_s7, 2048  ;;  %p735_p1 = scmp.lt.s32.totalorder %s13_s7, %s13_s7 }
   0x3   :  { %p731_p0 = scmp.ne.s32.totalorder %s13_s7, %s730_s8  ;;  %p736_p2 = scmp.lt.s32.totalorder %s730_s8, %s730_s8 }
   0x5   :  { %p737_p3 = por %p736_p2, %p735_p1 }
   0x7   :  { %p738_p4 = pnand %p737_p3, %p731_p0 }
   0x9   :  { %741 = shalt.err (!%p738_p4)
}
   0xa   :  { %s745_s9 = smov 128   ;;  %s746_s10 = smov 8  }
   0xb   :  { %18 = dma.hbm_to_vmem [thread:$0]  %s1484_s0, 2048, %s13_s7, [#allocation3], %s745_s9, %s745_s9, %s746_s10  }
   0xc   :  { %742 = dma.done.wait [#allocation3], 2048  }
   0xd   :  { %743 = vsyncadd [#allocation3], 4294965248  ;;  %v24_v0 = vld [vmem:[#allocation2 + $0x10] sm:$0xff]  ;;  %v22_v5 = vld [vmem:[#allocation2] sm:$0xff]  ;;  %s747_s0 = smov 127   ;;  %s748_s13 = smov 126  }
   0xe   :  { %v40_v1 = vld [vmem:[#allocation2 + $0x11] sm:$0xff]  ;;  %v38_v6 = vld [vmem:[#allocation2 + $0x1] sm:$0xff]  ;;  %v41_v11 = vld [vmem:[#allocation2 + $0x19] sm:$0x3f]  ;;  %vm694_vm0 = vcmask 113664   ;;  %vm696_vm1 = vcmask 111616  }
   0xf   :  { %v56_v2 = vld [vmem:[#allocation2 + $0x12] sm:$0xff]  ;;  %v762_v3 = vmin.f32 %v24_v0, %v40_v1  ;;  %v88_v4 = vmax.f32 %v24_v0, %v40_v1  ;;  %v54_v7 = vld [vmem:[#allocation2 + $0x2] sm:$0xff]  ;;  %v764_v8 = vmin.f32 %v22_v5, %v38_v6  ;;  %v86_v9 = vmax.f32 %v22_v5, %v38_v6  ;;  %v766_v12 = vld [vmem:[#allocation2 + $0x1a] sm:$0x3f] }
  0x10   :  { %v25_v10 = vld [vmem:[#allocation2 + $0x18] sm:$0x3f]  ;;  %v23_v16 = vld [vmem:[#allocation2 + $0x8] sm:$0x3f]  ;;  %v26_v30 = vld [vmem:[#allocation2 + $0x20] sm:$0xff] }
  0x11   :  { %v768_v13 = vmin.f32 %v88_v4, %v56_v2  ;;  %v770_v14 = vmin.f32 %v25_v10, %v41_v11  ;;  %v772_v15 = vmax.f32 %v25_v10, %v41_v11  ;;  %v39_v17 = vld [vmem:[#allocation2 + $0x9] sm:$0x3f]  ;;  %v776_v19 = vmax.f32 %v88_v4, %v56_v2  ;;  %v42_v31 = vld [vmem:[#allocation2 + $0x21] sm:$0xff]  ;;  %v29_v37 = vld [vmem:[#allocation2 + $0x38] sm:$0x3f] }
  0x12   :  { %v774_v18 = vld [vmem:[#allocation2 + $0xa] sm:$0x3f]  ;;  %v778_v20 = vmin.f32 %v86_v9, %v54_v7  ;;  %v780_v21 = vmin.f32 %v23_v16, %v39_v17  ;;  %v782_v22 = vmax.f32 %v23_v16, %v39_v17  ;;  %v786_v26 = vmax.f32 %v86_v9, %v54_v7  ;;  %v798_v32 = vld [vmem:[#allocation2 + $0x22] sm:$0xff]  ;;  %v45_v38 = vld [vmem:[#allocation2 + $0x39] sm:$0x3f] }
  0x13   :  { %1539 = vst [vmem:[#allocation5_spill] sm:$0xff] %v774_v18  ;;  %1540 = vst [vmem:[#allocation6_spill] sm:$0xff] %v776_v19  ;;  %v27_v23 = vld [vmem:[#allocation2 + $0x28] sm:$0x3f]  ;;  %v790_v27 = vmin.f32 %v762_v3, %v768_v13  ;;  %v794_v28 = vmin.f32 %v772_v15, %v766_v12  ;;  %v810_v36 = vmax.f32 %v26_v30, %v42_v31  ;;  %v812_v39 = vld [vmem:[#allocation2 + $0x3a] sm:$0x3f] }
  0x14   :  { %1541 = vst [vmem:[#allocation7_spill] sm:$0xff] %v782_v22  ;;  %v43_v24 = vld [vmem:[#allocation2 + $0x29] sm:$0x3f]  ;;  %1542 = vst [vmem:[#allocation8_spill] sm:$0xff] %v786_v26  ;;  %v802_v33 = vmin.f32 %v764_v8, %v778_v20  ;;  %v806_v34 = vmin.f32 %v782_v22, %v774_v18  ;;  %v824_v42 = vmax.f32 %v29_v37, %v45_v38  ;;  %v28_v43 = vld [vmem:[#allocation2 + $0x30] sm:$0xff] }
  0x15   :  { %v784_v25 = vld [vmem:[#allocation2 + $0x2a] sm:$0x3f]  ;;  %1543 = vst [vmem:[#allocation9_spill] sm:$0xff] %v790_v27  ;;  %v796_v29 = vmax.f32 %v27_v23, %v43_v24  ;;  %v808_v35 = vmin.f32 %v27_v23, %v43_v24  ;;  %186 = vrot.lane.b32.xlu1 %v790_v27, %s747_s0  ;;  %v818_v40 = vmin.f32 %v770_v14, %v794_v28  ;;  %v44_v44 = vld [vmem:[#allocation2 + $0x31] sm:$0xff]  ;;  %v30_v55 = vld [vmem:[#allocation2 + $0x40] sm:$0xff] }
  0x16   :  { %1544 = vst [vmem:[#allocation10_spill] sm:$0xff] %v802_v33  ;;  %v826_v45 = vld [vmem:[#allocation2 + $0x32] sm:$0xff]  ;;  %182 = vrot.lane.b32.xlu0 %v802_v33, %s747_s0  ;;  %v832_v46 = vmin.f32 %v780_v21, %v806_v34  ;;  %v834_v47 = vmin.f32 %v26_v30, %v42_v31  ;;  %v838_v48 = vmin.f32 %v810_v36, %v798_v32  ;;  %v31_v50 = vld [vmem:[#allocation2 + $0x48] sm:$0x3f]  ;;  %v65_v0 = vld [vmem:[#allocation2 + $0x5a] sm:$0x3f] }
  0x17   :  { %1545 = vst [vmem:[#allocation11_spill] sm:$0xff] %v808_v35  ;;  %1546 = vst [vmem:[#allocation12_spill] sm:$0xff] %v818_v40  ;;  %v822_v41 = vmin.f32 %v796_v29, %v784_v25  ;;  %v840_v49 = vmax.f32 %v28_v43, %v44_v44  ;;  %v47_v51 = vld [vmem:[#allocation2 + $0x49] sm:$0x3f]  ;;  %v844_v53 = vmin.f32 %v29_v37, %v45_v38  ;;  %v46_v56 = vld [vmem:[#allocation2 + $0x41] sm:$0xff] }
  0x18   :  { %1547 = vst [vmem:[#allocation13_spill] sm:$0xff] %v832_v46  ;;  %v842_v52 = vld [vmem:[#allocation2 + $0x4a] sm:$0x3f]  ;;  %v95_v54 = vmax.f32 %v31_v50, %v47_v51  ;;  %v846_v57 = vld [vmem:[#allocation2 + $0x42] sm:$0xff]  ;;  %v854_v59 = vmin.f32 %v824_v42, %v812_v39  ;;  %v856_v60 = vmin.f32 %v28_v43, %v44_v44  ;;  %v94_v61 = vmax.f32 %v30_v55, %v46_v56  ;;  %v33_v62 = vld [vmem:[#allocation2 + $0x58] sm:$0x3f] }
  0x19   :  { %1548 = vst [vmem:[#allocation14_spill] sm:$0xff] %v844_v53  ;;  %v850_v58 = vmin.f32 %v808_v35, %v822_v41  ;;  %v49_v63 = vld [vmem:[#allocation2 + $0x59] sm:$0x3f]  ;;  %188 = vrot.lane.b32.xlu1 %v818_v40, %s747_s0  ;;  %v862_v1 = vmin.f32 %v840_v49, %v826_v45  ;;  %v864_v2 = vmin.f32 %v31_v50, %v47_v51  ;;  %v32_v6 = vld [vmem:[#allocation2 + $0x50] sm:$0xff]  ;;  %v35_v23 = vld [vmem:[#allocation2 + $0x68] sm:$0x3f] }
  0x1a   :  { %1550 = vst [vmem:[#allocation16_spill] sm:$0xff] %v854_v59  ;;  %v867_v4 = vmin.f32 %v95_v54, %v842_v52  ;;  %v97_v5 = vmax.f32 %v33_v62, %v49_v63  ;;  %v48_v7 = vld [vmem:[#allocation2 + $0x51] sm:$0xff]  ;;  %184 = vrot.lane.b32.xlu0 %v832_v46, %s747_s0  ;;  %v873_v10 = vmin.f32 %v834_v47, %v838_v48  ;;  %v51_v24 = vld [vmem:[#allocation2 + $0x69] sm:$0x3f]  ;;  %v34_v38 = vld [vmem:[#allocation2 + $0x60] sm:$0xff] }
  0x1b   :  { %1549 = vst [vmem:[#allocation15_spill] sm:$0xff] %v850_v58  ;;  %1551 = vst [vmem:[#allocation17_spill] sm:$0xff] %v864_v2  ;;  %v64_v9 = vld [vmem:[#allocation2 + $0x52] sm:$0xff]  ;;  %v78_v11 = vmin.f32 %v30_v55, %v46_v56  ;;  %v110_v16 = vmin.f32 %v94_v61, %v846_v57  ;;  %v96_v17 = vmax.f32 %v32_v6, %v48_v7  ;;  %v50_v43 = vld [vmem:[#allocation2 + $0x61] sm:$0xff] }
  0x1c   :  { %1552 = vst [vmem:[#allocation18_spill] sm:$0xff] %v867_v4  ;;  %1553 = vst [vmem:[#allocation19_spill] sm:$0xff] %v873_v10  ;;  %v81_v30 = vmin.f32 %v33_v62, %v49_v63  ;;  %v113_v31 = vmin.f32 %v97_v5, %v65_v0  ;;  %v99_v37 = vmax.f32 %v35_v23, %v51_v24  ;;  %v67_v51 = vld [vmem:[#allocation2 + $0x6a] sm:$0x3f]  ;;  %v37_v26 = vld [vmem:[#allocation2 + $0x78] sm:$0x3f] }
  0x1d   :  { %v80_v44 = vmin.f32 %v32_v6, %v48_v7  ;;  %v112_v50 = vmin.f32 %v96_v17, %v64_v9  ;;  %v98_v19 = vmax.f32 %v34_v38, %v50_v43  ;;  %v53_v22 = vld [vmem:[#allocation2 + $0x79] sm:$0x3f]  ;;  %192 = vrot.lane.b32.xlu1 %v850_v58, %s747_s0  ;;  %v880_v55 = vmin.f32 %v844_v53, %v854_v59  ;;  %v66_v63 = vld [vmem:[#allocation2 + $0x62] sm:$0xff]  ;;  %v36_v6 = vld [vmem:[#allocation2 + $0x70] sm:$0xff] }
  0x1e   :  { %v884_v56 = vmin.f32 %v856_v60, %v862_v1  ;;  %v888_v62 = vmin.f32 %v864_v2, %v867_v4  ;;  %v52_v7 = vld [vmem:[#allocation2 + $0x71] sm:$0xff]  ;;  %190 = vrot.lane.b32.xlu0 %v873_v10, %s747_s0  ;;  %v892_v18 = vmin.f32 %v78_v11, %v110_v16  ;;  %v83_v58 = vmin.f32 %v35_v23, %v51_v24 }
  0x1f   :  { %v82_v27 = vmin.f32 %v34_v38, %v50_v43  ;;  %v100_v40 = vmax.f32 %v36_v6, %v52_v7  ;;  %v894_v33 = vmin.f32 %v81_v30, %v113_v31  ;;  %v115_v46 = vmin.f32 %v99_v37, %v67_v51  ;;  %v68_v59 = vld [vmem:[#allocation2 + $0x72] sm:$0xff] }
  0x20   :  { %v101_v53 = vmax.f32 %v37_v26, %v53_v22  ;;  %v898_v2 = vmax.f32 %v772_v15, %v766_v12  ;;  %v900_v4 = vmin.f32 %v80_v44, %v112_v50  ;;  %v114_v35 = vmin.f32 %v98_v19, %v66_v63 }
  0x21   :  { %v904_v10 = vmax.f32 %v796_v29, %v784_v25  ;;  %v908_v23 = vmax.f32 %v810_v36, %v798_v32  ;;  %196 = vrot.lane.b32.xlu1 %v880_v55, %s747_s0  ;;  %v84_v24 = vmin.f32 %v36_v6, %v52_v7  ;;  %v914_v38 = vmax.f32 %v824_v42, %v812_v39  ;;  %v69_v25 = vld [vmem:[#allocation2 + $0x7a] sm:$0x3f] }
  0x22   :  { %v918_v12 = vmax.f32 %v840_v49, %v826_v45  ;;  %v921_v15 = vmax.f32 %v95_v54, %v842_v52  ;;  %194 = vrot.lane.b32.xlu0 %v884_v56, %s747_s0  ;;  %v116_v29 = vmin.f32 %v100_v40, %v68_v59  ;;  %v926_v32 = vmax.f32 %v94_v61, %v846_v57 }
  0x23   :  { %1554 = vst [vmem:[#allocation20_spill] sm:$0xff] %v908_v23  ;;  %v928_v36 = vmax.f32 %v97_v5, %v65_v0  ;;  %v930_v43 = vmax.f32 %v96_v17, %v64_v9  ;;  %v932_v39 = vmax.f32 %v99_v37, %v67_v51  ;;  %v934_v42 = vmax.f32 %v98_v19, %v66_v63 }
  0x24   :  { %1555 = vst [vmem:[#allocation21_spill] sm:$0xff] %v918_v12  ;;  %1556 = vst [vmem:[#allocation22_spill] sm:$0xff] %v926_v32  ;;  %v936_v45 = vmax.f32 %v101_v53, %v69_v25  ;;  %v938_v49 = vmax.f32 %v100_v40, %v68_v59  ;;  %v942_v52 = vmax.f32 %v764_v8, %v778_v20 }
  0x25   :  { %1557 = vst [vmem:[#allocation23_spill] sm:$0xff] %v928_v36  ;;  %1558 = vst [vmem:[#allocation24_spill] sm:$0xff] %v930_v43  ;;  %v946_v54 = vmax.f32 %v762_v3, %v768_v13  ;;  %v950_v57 = vmax.f32 %v780_v21, %v806_v34  ;;  %v954_v19 = vmax.f32 %v834_v47, %v838_v48  ;;  %200 = vrot.lane.b32.xlu1 %v888_v62, %s747_s0  ;;  %v1563_v3 = vld [vmem:[#allocation11_spill] sm:$0xff]  ;;  %v1564_v21 = vld [vmem:[#allocation16_spill] sm:$0xff] }
  0x26   :  { %1559 = vst [vmem:[#allocation25_spill] sm:$0xff] %v932_v39  ;;  %1560 = vst [vmem:[#allocation26_spill] sm:$0xff] %v934_v42  ;;  %v960_v40 = vmax.f32 %v770_v14, %v794_v28  ;;  %v964_v8 = vmax.f32 %v856_v60, %v862_v1  ;;  %v968_v13 = vmax.f32 %v1563_v3, %v822_v41  ;;  %198 = vrot.lane.b32.xlu0 %v892_v18, %s747_s0  ;;  %v1565_v34 = vld [vmem:[#allocation14_spill] sm:$0xff]  ;;  %v1567_v28 = vld [vmem:[#allocation17_spill] sm:$0xff] }
  0x27   :  { %1561 = vst [vmem:[#allocation27_spill] sm:$0xff] %v936_v45  ;;  %1562 = vst [vmem:[#allocation28_spill] sm:$0xff] %v938_v49  ;;  %v970_v20 = vmax.f32 %v78_v11, %v110_v16  ;;  %v976_v47 = vmax.f32 %v1565_v34, %v1564_v21  ;;  %v978_v48 = vmax.f32 %v80_v44, %v112_v50  ;;  %v1566_v14 = vld [vmem:[#allocation18_spill] sm:$0xff]  ;;  %v1580_v44 = vld [vmem:[#allocation8_spill] sm:$0xff] }
  0x28   :  { %v982_v59 = vmax.f32 %v1567_v28, %v1566_v14  ;;  %v984_v60 = vmax.f32 %v82_v27, %v114_v35  ;;  %v986_v61 = vmax.f32 %v81_v30, %v113_v31  ;;  %v988_v41 = vmax.f32 %v84_v24, %v116_v29  ;;  %v1579_v31 = vld [vmem:[#allocation7_spill] sm:$0xff]  ;;  %v1581_v50 = vld [vmem:[#allocation6_spill] sm:$0xff] }
  0x29   :  { %v990_v0 = vmax.f32 %v83_v58, %v115_v46  ;;  %204 = vrot.lane.b32.xlu1 %v894_v33, %s747_s0  ;;  %v994_v1 = vmin.f32 %v83_v58, %v115_v46  ;;  %v85_v5 = vmin.f32 %v37_v26, %v53_v22  ;;  %v117_v9 = vmin.f32 %v101_v53, %v69_v25  ;;  %v1572_v22 = vld [vmem:[#allocation13_spill] sm:$0xff]  ;;  %v1573_v26 = vld [vmem:[#allocation10_spill] sm:$0xff]  ;;  %v1576_v46 = vld [vmem:[#allocation15_spill] sm:$0xff] }
  0x2a   :  { %1568 = vst [vmem:[#allocation11_spill] sm:$0xff] %v986_v61  ;;  %1569 = vst [vmem:[#allocation16_spill] sm:$0xff] %v988_v41  ;;  %202 = vrot.lane.b32.xlu0 %v900_v4, %s747_s0  ;;  %v998_v11 = vmin.f32 %v82_v27, %v114_v35  ;;  %v1008_v30 = vmin.f32 %v84_v24, %v116_v29  ;;  %v1574_v27 = vld [vmem:[#allocation12_spill] sm:$0xff]  ;;  %v1575_v35 = vld [vmem:[#allocation9_spill] sm:$0xff] }
  0x2b   :  { %1570 = vst [vmem:[#allocation14_spill] sm:$0xff] %v990_v0  ;;  %v1000_v16 = vmax.f32 %v85_v5, %v117_v9  ;;  %v1004_v17 = vmin.f32 %v85_v5, %v117_v9  ;;  %v1577_v53 = vld [vmem:[#allocation19_spill] sm:$0xff]  ;;  %v1578_v58 = vld [vmem:[#allocation5_spill] sm:$0xff] }
  0x2c   :  { %v1046_v37 = vmax.f32 %v1579_v31, %v1578_v58 }
  0x2d   :  { %1571 = vst [vmem:[#allocation18_spill] sm:$0xff] %v1000_v16  ;;  %208 = vrot.lane.b32.xlu1 %v994_v1, %s747_s0 }
  0x2e   :  { %206 = vrot.lane.b32.xlu0 %v998_v11, %s747_s0 }
  0x31   :  { %212 = vrot.lane.b32.xlu1 %v1004_v17, %s747_s0 }
  0x32   :  { %210 = vrot.lane.b32.xlu0 %v1008_v30, %s747_s0 }
  0x35   :  { %248 = vrot.lane.b32.xlu1 %v1572_v22, %s748_s13 }
  0x36   :  { %246 = vrot.lane.b32.xlu0 %v1573_v26, %s748_s13 }
  0x39   :  { %252 = vrot.lane.b32.xlu1 %v1574_v27, %s748_s13 }
  0x3a   :  { %250 = vrot.lane.b32.xlu0 %v1575_v35, %s748_s13 }
  0x3d   :  { %256 = vrot.lane.b32.xlu1 %v1576_v46, %s748_s13 }
  0x3e   :  { %254 = vrot.lane.b32.xlu0 %v1577_v53, %s748_s13 }
  0x41   :  { %260 = vrot.lane.b32.xlu1 %v880_v55, %s748_s13 }
  0x42   :  { %258 = vrot.lane.b32.xlu0 %v884_v56, %s748_s13 }
  0x45   :  { %264 = vrot.lane.b32.xlu1 %v888_v62, %s748_s13 }
  0x46   :  { %262 = vrot.lane.b32.xlu0 %v892_v18, %s748_s13 }
  0x49   :  { %268 = vrot.lane.b32.xlu1 %v894_v33, %s748_s13 }
  0x4a   :  { %266 = vrot.lane.b32.xlu0 %v900_v4, %s748_s13 }
  0x4d   :  { %272 = vrot.lane.b32.xlu1 %v994_v1, %s748_s13 }
  0x4e   :  { %270 = vrot.lane.b32.xlu0 %v998_v11, %s748_s13 }
  0x51   :  { %276 = vrot.lane.b32.xlu1 %v1004_v17, %s748_s13 }
  0x52   :  { %274 = vrot.lane.b32.xlu0 %v1008_v30, %s748_s13 }
  0x55   :  { %328 = vrot.lane.b32.xlu1 %v1046_v37, %s747_s0 }
  0x56   :  { %326 = vrot.lane.b32.xlu0 %v1580_v44, %s747_s0 }
  0x59   :  { %332 = vrot.lane.b32.xlu1 %v898_v2, %s747_s0 }
  0x5a   :  { %330 = vrot.lane.b32.xlu0 %v1581_v50, %s747_s0 }
  0x5d   :  { %336 = vrot.lane.b32.xlu1 %v904_v10, %s747_s0 }
  0x5e   :  { %334 = vrot.lane.b32.xlu0 %v908_v23, %s747_s0 }
  0x61   :  { %340 = vrot.lane.b32.xlu1 %v914_v38, %s747_s0 }
  0x62   :  { %338 = vrot.lane.b32.xlu0 %v918_v12, %s747_s0 }
  0x65   :  { %344 = vrot.lane.b32.xlu1 %v921_v15, %s747_s0 }
  0x66   :  { %342 = vrot.lane.b32.xlu0 %v926_v32, %s747_s0 }
  0x69   :  { %348 = vrot.lane.b32.xlu1 %v928_v36, %s747_s0 }
  0x6a   :  { %346 = vrot.lane.b32.xlu0 %v930_v43, %s747_s0 }
  0x6d   :  { %352 = vrot.lane.b32.xlu1 %v932_v39, %s747_s0 }
  0x6e   :  { %350 = vrot.lane.b32.xlu0 %v934_v42, %s747_s0 }
  0x71   :  { %356 = vrot.lane.b32.xlu1 %v936_v45, %s747_s0 }
  0x72   :  { %354 = vrot.lane.b32.xlu0 %v938_v49, %s747_s0 }
  0x75   :  { %392 = vrot.lane.b32.xlu1 %v1046_v37, %s748_s13 }
  0x76   :  { %390 = vrot.lane.b32.xlu0 %v1580_v44, %s748_s13 }
  0x79   :  { %396 = vrot.lane.b32.xlu1 %v898_v2, %s748_s13 }
  0x7a   :  { %394 = vrot.lane.b32.xlu0 %v1581_v50, %s748_s13 }
  0x7d   :  { %400 = vrot.lane.b32.xlu1 %v904_v10, %s748_s13 }
  0x7e   :  { %398 = vrot.lane.b32.xlu0 %v908_v23, %s748_s13 }
  0x81   :  { %404 = vrot.lane.b32.xlu1 %v914_v38, %s748_s13 }
  0x82   :  { %402 = vrot.lane.b32.xlu0 %v918_v12, %s748_s13 }
  0x85   :  { %408 = vrot.lane.b32.xlu1 %v921_v15, %s748_s13 }
  0x86   :  { %406 = vrot.lane.b32.xlu0 %v926_v32, %s748_s13 }
  0x87   :  { %v187_v51 = vpop.permute.xlu1 %186 }
  0x88   :  { %v183_v63 = vpop.permute.xlu0 %182 }
  0x89   :  { %412 = vrot.lane.b32.xlu1 %v928_v36, %s748_s13 }
  0x8a   :  { %410 = vrot.lane.b32.xlu0 %v930_v43, %s748_s13  ;;  %v230_v43 = vmax.f32 %v1573_v26, %v183_v63 }
  0x8b   :  { %v189_v6 = vpop.permute.xlu1 %188 }
  0x8c   :  { %v185_v7 = vpop.permute.xlu0 %184  ;;  %v233_v44 = vmax.f32 %v1574_v27, %v189_v6 }
  0x8d   :  { %470 = vrot.lane.b32.xlu1 %v942_v52, %s747_s0 }
  0x8e   :  { %414 = vrot.lane.b32.xlu0 %v934_v42, %s748_s13  ;;  %v231_v42 = vmax.f32 %v1572_v22, %v185_v7  ;;  %v232_v22 = vmax.f32 %v1575_v35, %v187_v51 }
  0x8f   :  { %v193_v24 = vpop.permute.xlu1 %192 }
  0x90   :  { %v191_v25 = vpop.permute.xlu0 %190 }
  0x91   :  { %474 = vrot.lane.b32.xlu1 %v946_v54, %s747_s0 }
  0x92   :  { %472 = vrot.lane.b32.xlu0 %v950_v57, %s747_s0 }
  0x93   :  { %v197_v29 = vpop.permute.xlu1 %196 }
  0x94   :  { %v195_v3 = vpop.permute.xlu0 %194 }
  0x95   :  { %478 = vrot.lane.b32.xlu1 %v954_v19, %s747_s0 }
  0x96   :  { %476 = vrot.lane.b32.xlu0 %v960_v40, %s747_s0 }
  0x97   :  { %v201_v21 = vpop.permute.xlu1 %200 }
  0x98   :  { %v199_v34 = vpop.permute.xlu0 %198 }
  0x99   :  { %482 = vrot.lane.b32.xlu1 %v964_v8, %s747_s0 }
  0x9a   :  { %480 = vrot.lane.b32.xlu0 %v968_v13, %s747_s0 }
  0x9b   :  { %v205_v14 = vpop.permute.xlu1 %204 }
  0x9c   :  { %v203_v28 = vpop.permute.xlu0 %202 }
  0x9d   :  { %486 = vrot.lane.b32.xlu1 %v970_v20, %s747_s0 }
  0x9e   :  { %484 = vrot.lane.b32.xlu0 %v976_v47, %s747_s0 }
  0x9f   :  { %v209_v5 = vpop.permute.xlu1 %208 }
  0xa0   :  { %v207_v9 = vpop.permute.xlu0 %206 }
  0xa1   :  { %490 = vrot.lane.b32.xlu1 %v978_v48, %s747_s0 }
  0xa2   :  { %488 = vrot.lane.b32.xlu0 %v982_v59, %s747_s0 }
  0xa3   :  { %v1130_v58 = vpop.permute.xlu1 %212 }
  0xa4   :  { %v1132_v31 = vpop.permute.xlu0 %210 }
  0xa5   :  { %494 = vrot.lane.b32.xlu1 %v984_v60, %s747_s0 }
  0xa6   :  { %492 = vrot.lane.b32.xlu0 %v986_v61, %s747_s0 }
  0xa7   :  { %v249_v32 = vpop.permute.xlu1 %248 }
  0xa8   :  { %v1140_v12 = vmax.f32 %v231_v42, %v249_v32  ;;  %v247_v23 = vpop.permute.xlu0 %246  ;;  %v234_v32 = vmax.f32 %v1577_v53, %v191_v25  ;;  %v239_v25 = vmax.f32 %v888_v62, %v201_v21  ;;  %v240_v62 = vmax.f32 %v900_v4, %v203_v28 }
  0xa9   :  { %v1142_v50 = vmax.f32 %v230_v43, %v247_v23  ;;  %498 = vrot.lane.b32.xlu1 %v988_v41, %s747_s0  ;;  %v235_v23 = vmax.f32 %v1576_v46, %v193_v24  ;;  %v236_v46 = vmax.f32 %v884_v56, %v195_v3 }
  0xaa   :  { %496 = vrot.lane.b32.xlu0 %v990_v0, %s747_s0 }
  0xab   :  { %v253_v7 = vpop.permute.xlu1 %252 }
  0xac   :  { %v1150_v36 = vmax.f32 %v233_v44, %v253_v7  ;;  %v251_v26 = vpop.permute.xlu0 %250  ;;  %v237_v44 = vmax.f32 %v880_v55, %v197_v29  ;;  %v238_v55 = vmax.f32 %v892_v18, %v199_v34  ;;  %v241_v7 = vmax.f32 %v894_v33, %v205_v14 }
  0xad   :  { %v1152_v63 = vmax.f32 %v232_v22, %v251_v26  ;;  %550 = vrot.lane.b32.xlu1 %v942_v52, %s748_s13  ;;  %v242_v33 = vmax.f32 %v998_v11, %v207_v9 }
  0xae   :  { %500 = vrot.lane.b32.xlu0 %v1000_v16, %s747_s0 }
  0xaf   :  { %v257_v43 = vpop.permute.xlu1 %256 }
  0xb0   :  { %v1160_v42 = vmax.f32 %v235_v23, %v257_v43  ;;  %v255_v27 = vpop.permute.xlu0 %254  ;;  %v243_v23 = vmax.f32 %v994_v1, %v209_v5  ;;  %v245_v43 = vmax.f32 %v1004_v17, %v1130_v58  ;;  %v244_v1 = vmax.f32 %v1008_v30, %v1132_v31 }
  0xb1   :  { %v1162_v35 = vmax.f32 %v234_v32, %v255_v27  ;;  %554 = vrot.lane.b32.xlu1 %v946_v54, %s748_s13 }
  0xb2   :  { %552 = vrot.lane.b32.xlu0 %v950_v57, %s748_s13 }
  0xb3   :  { %v261_v51 = vpop.permute.xlu1 %260 }
  0xb4   :  { %v1170_v6 = vmax.f32 %v237_v44, %v261_v51  ;;  %v259_v53 = vpop.permute.xlu0 %258 }
  0xb5   :  { %v1172_v24 = vmax.f32 %v236_v46, %v259_v53  ;;  %558 = vrot.lane.b32.xlu1 %v954_v19, %s748_s13 }
  0xb6   :  { %556 = vrot.lane.b32.xlu0 %v960_v40, %s748_s13 }
  0xb7   :  { %v265_v29 = vpop.permute.xlu1 %264 }
  0xb8   :  { %v1180_v22 = vmax.f32 %v239_v25, %v265_v29  ;;  %v263_v56 = vpop.permute.xlu0 %262 }
  0xb9   :  { %v1182_v3 = vmax.f32 %v238_v55, %v263_v56  ;;  %562 = vrot.lane.b32.xlu1 %v964_v8, %s748_s13 }
  0xba   :  { %1582 = vst [vmem:[#allocation17_spill] sm:$0xff] %v1180_v22  ;;  %560 = vrot.lane.b32.xlu0 %v968_v13, %s748_s13 }
  0xbb   :  { %v269_v21 = vpop.permute.xlu1 %268 }
  0xbc   :  { %v1190_v26 = vmax.f32 %v241_v7, %v269_v21  ;;  %v267_v18 = vpop.permute.xlu0 %266 }
  0xbd   :  { %v1192_v34 = vmax.f32 %v240_v62, %v267_v18  ;;  %566 = vrot.lane.b32.xlu1 %v970_v20, %s748_s13 }
  0xbe   :  { %1583 = vst [vmem:[#allocation13_spill] sm:$0xff] %v1190_v26  ;;  %564 = vrot.lane.b32.xlu0 %v976_v47, %s748_s13 }
  0xbf   :  { %1584 = vst [vmem:[#allocation10_spill] sm:$0xff] %v1192_v34  ;;  %v273_v14 = vpop.permute.xlu1 %272  ;;  %v1604_v34 = vld [vmem:[#allocation20_spill] sm:$0xff] }
  0xc0   :  { %v1200_v32 = vmax.f32 %v243_v23, %v273_v14  ;;  %v271_v4 = vpop.permute.xlu0 %270 }
  0xc1   :  { %v1202_v28 = vmax.f32 %v242_v33, %v271_v4  ;;  %570 = vrot.lane.b32.xlu1 %v978_v48, %s748_s13 }
  0xc2   :  { %1585 = vst [vmem:[#allocation12_spill] sm:$0xff] %v1200_v32  ;;  %568 = vrot.lane.b32.xlu0 %v982_v59, %s748_s13 }
  0xc3   :  { %1586 = vst [vmem:[#allocation9_spill] sm:$0xff] %v1202_v28  ;;  %v277_v5 = vpop.permute.xlu1 %276 }
  0xc4   :  { %v1212_v11 = vmax.f32 %v245_v43, %v277_v5  ;;  %v275_v9 = vpop.permute.xlu0 %274 }
  0xc5   :  { %v1214_v27 = vmax.f32 %v244_v1, %v275_v9  ;;  %574 = vrot.lane.b32.xlu1 %v984_v60, %s748_s13 }
  0xc6   :  { %1587 = vst [vmem:[#allocation15_spill] sm:$0xff] %v1212_v11  ;;  %572 = vrot.lane.b32.xlu0 %v986_v61, %s748_s13 }
  0xc7   :  { %1588 = vst [vmem:[#allocation19_spill] sm:$0xff] %v1214_v27  ;;  %v329_v44 = vpop.permute.xlu1 %328 }
  0xc8   :  { %v1220_v17 = vpop.permute.xlu0 %326  ;;  %v375_v23 = vmin.f32 %v1046_v37, %v329_v44 }
  0xc9   :  { %578 = vrot.lane.b32.xlu1 %v988_v41, %s748_s13  ;;  %v1603_v41 = vld [vmem:[#allocation6_spill] sm:$0xff] }
  0xca   :  { %576 = vrot.lane.b32.xlu0 %v990_v0, %s748_s13 }
  0xcb   :  { %v333_v30 = vpop.permute.xlu1 %332 }
  0xcc   :  { %v1226_v58 = vpop.permute.xlu0 %330  ;;  %v377_v43 = vmin.f32 %v898_v2, %v333_v30 }
  0xcd   :  { %416 = vrot.lane.b32.xlu1 %v932_v39, %s748_s13  ;;  %v376_v22 = vmin.f32 %v1603_v41, %v1226_v58 }
  0xce   :  { %580 = vrot.lane.b32.xlu0 %v1000_v16, %s748_s13 }
  0xcf   :  { %v337_v31 = vpop.permute.xlu1 %336 }
  0xd0   :  { %v1232_v46 = vpop.permute.xlu0 %334  ;;  %v379_v27 = vmin.f32 %v904_v10, %v337_v31 }
  0xd1   :  { %420 = vrot.lane.b32.xlu1 %v936_v45, %s748_s13 }
  0xd2   :  { %418 = vrot.lane.b32.xlu0 %v938_v49, %s748_s13 }
  0xd3   :  { %v341_v51 = vpop.permute.xlu1 %340 }
  0xd4   :  { %v1238_v53 = vpop.permute.xlu0 %338 }
  0xd7   :  { %v345_v25 = vpop.permute.xlu1 %344 }
  0xd8   :  { %v1240_v55 = vpop.permute.xlu0 %342 }
  0xdb   :  { %v349_v29 = vpop.permute.xlu1 %348 }
  0xdc   :  { %v1242_v56 = vpop.permute.xlu0 %346 }
  0xdf   :  { %v1244_v7 = vpop.permute.xlu1 %352 }
  0xe0   :  { %1589 = vst [vmem:[#allocation5_spill] sm:$0xff] %v1244_v7  ;;  %v1246_v62 = vpop.permute.xlu0 %350 }
  0xe1   :  { %1590 = vst [vmem:[#allocation7_spill] sm:$0xff] %v1246_v62 }
  0xe3   :  { %v1248_v21 = vpop.permute.xlu1 %356 }
  0xe4   :  { %1591 = vst [vmem:[#allocation29_spill] sm:$0xff] %v1248_v21  ;;  %v1250_v18 = vpop.permute.xlu0 %354 }
  0xe5   :  { %1592 = vst [vmem:[#allocation30_spill] sm:$0xff] %v1250_v18  ;;  %v381_v18 = vmin.f32 %v914_v38, %v341_v51 }
  0xe7   :  { %v393_v33 = vpop.permute.xlu1 %392 }
  0xe8   :  { %v1253_v14 = vmin.f32 %v375_v23, %v393_v33  ;;  %v391_v4 = vpop.permute.xlu0 %390  ;;  %v383_v23 = vmin.f32 %v921_v15, %v345_v25 }
  0xeb   :  { %v397_v1 = vpop.permute.xlu1 %396 }
  0xec   :  { %v1256_v5 = vmin.f32 %v377_v43, %v397_v1  ;;  %v395_v9 = vpop.permute.xlu0 %394  ;;  %v1595_v43 = vld [vmem:[#allocation23_spill] sm:$0xff] }
  0xed   :  { %v385_v1 = vmin.f32 %v1595_v43, %v349_v29 }
  0xef   :  { %v401_v11 = vpop.permute.xlu1 %400 }
  0xf0   :  { %v1259_v49 = vmin.f32 %v379_v27, %v401_v11  ;;  %v399_v45 = vpop.permute.xlu0 %398 }
  0xf3   :  { %v405_v21 = vpop.permute.xlu1 %404 }
  0xf4   :  { %v1262_v37 = vmin.f32 %v381_v18, %v405_v21  ;;  %v403_v44 = vpop.permute.xlu0 %402 }
  0xf6   :  { %1593 = vst [vmem:[#allocation31_spill] sm:$0xff] %v1262_v37 }
  0xf7   :  { %v409_v33 = vpop.permute.xlu1 %408 }
  0xf8   :  { %v1265_v2 = vmin.f32 %v383_v23, %v409_v33  ;;  %v407_v30 = vpop.permute.xlu0 %406 }
  0xfa   :  { %1594 = vst [vmem:[#allocation32_spill] sm:$0xff] %v1265_v2  ;;  %v1602_v2 = vld [vmem:[#allocation8_spill] sm:$0xff] }
  0xfb   :  { %v413_v32 = vpop.permute.xlu1 %412  ;;  %v374_v0 = vmin.f32 %v1602_v2, %v1220_v17 }
  0xfc   :  { %v1268_v10 = vmin.f32 %v385_v1, %v413_v32  ;;  %v411_v11 = vpop.permute.xlu0 %410 }
  0xfe   :  { %1596 = vst [vmem:[#allocation23_spill] sm:$0xff] %v1268_v10 }
  0xff   :  { %v471_v27 = vpop.permute.xlu1 %470 }
 0x100   :  { %v1270_v31 = vpop.permute.xlu0 %414  ;;  %v534_v39 = vmax.f32 %v942_v52, %v471_v27  ;;  %v518_v26 = vmin.f32 %v942_v52, %v471_v27 }
 0x101   :  { %1597 = vst [vmem:[#allocation33_spill] sm:$0xff] %v1270_v31 }
 0x103   :  { %v475_v38 = vpop.permute.xlu1 %474 }
 0x104   :  { %v473_v51 = vpop.permute.xlu0 %472  ;;  %v536_v61 = vmax.f32 %v946_v54, %v475_v38 }
 0x105   :  { %v535_v41 = vmax.f32 %v950_v57, %v473_v51 }
 0x107   :  { %v479_v21 = vpop.permute.xlu1 %478 }
 0x108   :  { %v1272_v18 = vpop.permute.xlu0 %476 }
 0x10b   :  { %v1274_v16 = vpop.permute.xlu1 %482 }
 0x10c   :  { %v1276_v15 = vpop.permute.xlu0 %480 }
 0x10f   :  { %v1278_v25 = vpop.permute.xlu1 %486 }
 0x110   :  { %v1280_v23 = vpop.permute.xlu0 %484 }
 0x113   :  { %v1282_v29 = vpop.permute.xlu1 %490 }
 0x114   :  { %v1284_v32 = vpop.permute.xlu0 %488 }
 0x117   :  { %v1286_v33 = vpop.permute.xlu1 %494 }
 0x118   :  { %v1288_v43 = vpop.permute.xlu0 %492 }
 0x119   :  { %1598 = vst [vmem:[#allocation34_spill] sm:$0xff] %v1288_v43 }
 0x11b   :  { %v1290_v1 = vpop.permute.xlu1 %498 }
 0x11c   :  { %1599 = vst [vmem:[#allocation35_spill] sm:$0xff] %v1290_v1  ;;  %v1292_v10 = vpop.permute.xlu0 %496  ;;  %v378_v1 = vmin.f32 %v1604_v34, %v1232_v46  ;;  %v520_v34 = vmin.f32 %v946_v54, %v475_v38  ;;  %v537_v54 = vmax.f32 %v960_v40, %v1272_v18 }
 0x11d   :  { %1600 = vst [vmem:[#allocation36_spill] sm:$0xff] %v1292_v10  ;;  %v1605_v10 = vld [vmem:[#allocation21_spill] sm:$0xff] }
 0x11e   :  { %v380_v37 = vmin.f32 %v1605_v10, %v1238_v53  ;;  %v442_v10 = vmin.f32 %v378_v1, %v399_v45 }
 0x11f   :  { %v551_v7 = vpop.permute.xlu1 %550 }
 0x120   :  { %v598_v28 = vmin.f32 %v534_v39, %v551_v7  ;;  %v1296_v31 = vpop.permute.xlu0 %500  ;;  %v1606_v39 = vld [vmem:[#allocation22_spill] sm:$0xff]  ;;  %v1607_v7 = vld [vmem:[#allocation24_spill] sm:$0xff]  ;;  %v444_v17 = vmin.f32 %v380_v37, %v403_v44 }
 0x121   :  { %1601 = vst [vmem:[#allocation37_spill] sm:$0xff] %v1296_v31  ;;  %v382_v52 = vmin.f32 %v1606_v39, %v1240_v55  ;;  %v384_v27 = vmin.f32 %v1607_v7, %v1242_v56  ;;  %v438_v31 = vmin.f32 %v374_v0, %v391_v4  ;;  %v519_v55 = vmin.f32 %v950_v57, %v473_v51 }
 0x122   :  { %v614_v43 = vmax.f32 %v518_v26, %v598_v28  ;;  %v440_v28 = vmin.f32 %v376_v22, %v395_v9  ;;  %v538_v56 = vmax.f32 %v954_v19, %v479_v21  ;;  %v522_v22 = vmin.f32 %v954_v19, %v479_v21 }
 0x123   :  { %v555_v58 = vpop.permute.xlu1 %554  ;;  %v1319_v0 = vmin.f32 %v382_v52, %v407_v30  ;;  %v1325_v51 = vmin.f32 %v384_v27, %v411_v11  ;;  %v540_v30 = vmax.f32 %v964_v8, %v1274_v16  ;;  %v539_v11 = vmax.f32 %v968_v13, %v1276_v15 }
 0x124   :  { %v646_v46 = vmax.f32 %v1142_v50, %v614_v43  ;;  %v600_v53 = vmin.f32 %v536_v61, %v555_v58  ;;  %v553_v26 = vpop.permute.xlu0 %552  ;;  %v630_v7 = vmin.f32 %v1142_v50, %v614_v43  ;;  %v521_v50 = vmin.f32 %v960_v40, %v1272_v18 }
 0x125   :  { %v599_v39 = vmin.f32 %v535_v41, %v553_v26  ;;  %v524_v52 = vmin.f32 %v964_v8, %v1274_v16 }
 0x126   :  { %v662_v2 = vmin.f32 %v646_v46, %v438_v31  ;;  %v616_v62 = vmax.f32 %v520_v34, %v600_v53  ;;  %v541_v53 = vmax.f32 %v976_v47, %v1280_v23 }
 0x127   :  { %v615_v61 = vmax.f32 %v519_v55, %v599_v39  ;;  %v559_v4 = vpop.permute.xlu1 %558  ;;  %v526_v55 = vmin.f32 %v970_v20, %v1278_v25 }
 0x128   :  { %v678_v45 = vmax.f32 %v630_v7, %v662_v2  ;;  %v648_v57 = vmax.f32 %v1152_v63, %v616_v62  ;;  %v602_v9 = vmin.f32 %v538_v56, %v559_v4  ;;  %v557_v38 = vpop.permute.xlu0 %556  ;;  %v632_v19 = vmin.f32 %v1152_v63, %v616_v62 }
 0x129   :  { %v647_v37 = vmax.f32 %v1140_v12, %v615_v61  ;;  %v601_v44 = vmin.f32 %v537_v54, %v557_v38  ;;  %v631_v40 = vmin.f32 %v1140_v12, %v615_v61  ;;  %v523_v63 = vmin.f32 %v968_v13, %v1276_v15 }
 0x12a   :  { %695 = vst.msk [vmem:[%s1485_s1] sm:$0xff] %vm694_vm0, %v678_v45  ;;  %v664_v31 = vmin.f32 %v648_v57, %v440_v28  ;;  %v618_v21 = vmax.f32 %v522_v22, %v602_v9  ;;  %v542_v12 = vmax.f32 %v970_v20, %v1278_v25  ;;  %v525_v7 = vmin.f32 %v976_v47, %v1280_v23 }
 0x12b   :  { %v663_v18 = vmin.f32 %v647_v37, %v1253_v14  ;;  %v617_v43 = vmax.f32 %v521_v50, %v601_v44  ;;  %v563_v1 = vpop.permute.xlu1 %562  ;;  %v543_v22 = vmax.f32 %v982_v59, %v1284_v32  ;;  %v528_v9 = vmin.f32 %v978_v48, %v1282_v29 }
 0x12c   :  { %v680_v27 = vmax.f32 %v632_v19, %v664_v31  ;;  %v650_v2 = vmax.f32 %v1162_v35, %v618_v21  ;;  %v604_v41 = vmin.f32 %v540_v30, %v563_v1  ;;  %v561_v58 = vpop.permute.xlu0 %560  ;;  %v634_v8 = vmin.f32 %v1162_v35, %v618_v21  ;;  %v1609_v31 = vld [vmem:[#allocation34_spill] sm:$0xff]  ;;  %v1610_v21 = vld [vmem:[#allocation11_spill] sm:$0xff] }
 0x12d   :  { %v679_v62 = vmax.f32 %v631_v40, %v663_v18  ;;  %v649_v34 = vmax.f32 %v1150_v36, %v617_v43  ;;  %v603_v46 = vmin.f32 %v539_v11, %v561_v58  ;;  %v633_v13 = vmin.f32 %v1150_v36, %v617_v43  ;;  %v1611_v11 = vld [vmem:[#allocation31_spill] sm:$0xff] }
 0x12e   :  { %698 = vst.msk [vmem:[%s1485_s1 + $0x10] sm:$0xff] %vm694_vm0, %v680_v27  ;;  %v666_v16 = vmin.f32 %v650_v2, %v442_v10  ;;  %v620_v14 = vmax.f32 %v524_v52, %v604_v41  ;;  %v544_v36 = vmax.f32 %v978_v48, %v1282_v29  ;;  %v527_v37 = vmin.f32 %v982_v59, %v1284_v32 }
 0x12f   :  { %697 = vst.msk [vmem:[%s1485_s1 + $0x8] sm:$0x3f] %vm696_vm1, %v679_v62  ;;  %v665_v15 = vmin.f32 %v649_v34, %v1256_v5  ;;  %v619_v26 = vmax.f32 %v523_v63, %v603_v46  ;;  %v567_v28 = vpop.permute.xlu1 %566  ;;  %v545_v59 = vmax.f32 %v1610_v21, %v1609_v31  ;;  %v529_v41 = vmin.f32 %v1610_v21, %v1609_v31  ;;  %v1613_v63 = vld [vmem:[#allocation17_spill] sm:$0xff]  ;;  %v1615_v46 = vld [vmem:[#allocation16_spill] sm:$0xff] }
 0x130   :  { %v682_v35 = vmax.f32 %v634_v8, %v666_v16  ;;  %v652_v10 = vmax.f32 %v1172_v24, %v620_v14  ;;  %v606_v39 = vmin.f32 %v542_v12, %v567_v28  ;;  %v565_v56 = vpop.permute.xlu0 %564  ;;  %v636_v20 = vmin.f32 %v1172_v24, %v620_v14  ;;  %v1616_v16 = vld [vmem:[#allocation36_spill] sm:$0xff]  ;;  %v1617_v14 = vld [vmem:[#allocation14_spill] sm:$0xff] }
 0x131   :  { %v681_v54 = vmax.f32 %v633_v13, %v665_v15  ;;  %v651_v61 = vmax.f32 %v1160_v42, %v619_v26  ;;  %v605_v4 = vmin.f32 %v541_v53, %v565_v56  ;;  %v635_v47 = vmin.f32 %v1160_v42, %v619_v26  ;;  %v1618_v15 = vld [vmem:[#allocation32_spill] sm:$0xff] }
 0x132   :  { %700 = vst.msk [vmem:[%s1485_s1 + $0x20] sm:$0xff] %vm694_vm0, %v682_v35  ;;  %v668_v5 = vmin.f32 %v652_v10, %v444_v17  ;;  %v622_v25 = vmax.f32 %v526_v55, %v606_v39  ;;  %v547_v53 = vmax.f32 %v1617_v14, %v1616_v16  ;;  %v1619_v35 = vld [vmem:[#allocation33_spill] sm:$0xff]  ;;  %v1620_v10 = vld [vmem:[#allocation26_spill] sm:$0xff]  ;;  %v1621_v39 = vld [vmem:[#allocation7_spill] sm:$0xff] }
 0x133   :  { %699 = vst.msk [vmem:[%s1485_s1 + $0x18] sm:$0x3f] %vm696_vm1, %v681_v54  ;;  %v667_v23 = vmin.f32 %v651_v61, %v1259_v49  ;;  %v621_v45 = vmax.f32 %v525_v7, %v605_v4  ;;  %v571_v57 = vpop.permute.xlu1 %570  ;;  %v546_v49 = vmax.f32 %v984_v60, %v1286_v33  ;;  %v1622_v56 = vmin.f32 %v1620_v10, %v1621_v39  ;;  %v1623_v61 = vld [vmem:[#allocation9_spill] sm:$0xff] }
 0x134   :  { %v684_v24 = vmax.f32 %v636_v20, %v668_v5  ;;  %v654_v17 = vmax.f32 %v1182_v3, %v622_v25  ;;  %v608_v38 = vmin.f32 %v544_v36, %v571_v57  ;;  %v569_v50 = vpop.permute.xlu0 %568  ;;  %v638_v48 = vmin.f32 %v1182_v3, %v622_v25  ;;  %v1624_v5 = vld [vmem:[#allocation13_spill] sm:$0xff] }
 0x135   :  { %v683_v44 = vmax.f32 %v635_v47, %v667_v23  ;;  %v653_v30 = vmax.f32 %v1170_v6, %v621_v45  ;;  %v607_v19 = vmin.f32 %v543_v22, %v569_v50  ;;  %v637_v32 = vmin.f32 %v1170_v6, %v621_v45  ;;  %v1614_v6 = vld [vmem:[#allocation35_spill] sm:$0xff]  ;;  %v1625_v23 = vld [vmem:[#allocation5_spill] sm:$0xff]  ;;  %v1628_v50 = vld [vmem:[#allocation18_spill] sm:$0xff] }
 0x136   :  { %702 = vst.msk [vmem:[%s1485_s1 + $0x30] sm:$0xff] %vm694_vm0, %v684_v24  ;;  %v670_v42 = vmin.f32 %v654_v17, %v1319_v0  ;;  %v624_v29 = vmax.f32 %v528_v9, %v608_v38  ;;  %v530_v3 = vmin.f32 %v984_v60, %v1286_v33  ;;  %v1612_v0 = vld [vmem:[#allocation10_spill] sm:$0xff]  ;;  %v548_v12 = vmax.f32 %v1615_v46, %v1614_v6  ;;  %v1626_v45 = vld [vmem:[#allocation25_spill] sm:$0xff] }
 0x137   :  { %701 = vst.msk [vmem:[%s1485_s1 + $0x28] sm:$0x3f] %vm696_vm1, %v683_v44  ;;  %v669_v40 = vmin.f32 %v653_v30, %v1611_v11  ;;  %v623_v18 = vmax.f32 %v527_v37, %v607_v19  ;;  %v575_v43 = vpop.permute.xlu1 %574  ;;  %v531_v7 = vmin.f32 %v1617_v14, %v1616_v16  ;;  %v387_v57 = vmin.f32 %v1626_v45, %v1625_v23  ;;  %v1627_v38 = vld [vmem:[#allocation37_spill] sm:$0xff]  ;;  %v1629_v30 = vld [vmem:[#allocation23_spill] sm:$0xff]  ;;  %v1630_v11 = vld [vmem:[#allocation12_spill] sm:$0xff] }
 0x138   :  { %v686_v1 = vmax.f32 %v638_v48, %v670_v42  ;;  %v656_v52 = vmax.f32 %v1612_v0, %v624_v29  ;;  %v610_v27 = vmin.f32 %v546_v49, %v575_v43  ;;  %v573_v2 = vpop.permute.xlu0 %572  ;;  %v640_v60 = vmin.f32 %v1612_v0, %v624_v29  ;;  %v1631_v43 = vld [vmem:[#allocation29_spill] sm:$0xff]  ;;  %v1633_v0 = vld [vmem:[#allocation30_spill] sm:$0xff] }
 0x139   :  { %v685_v58 = vmax.f32 %v637_v32, %v669_v40  ;;  %v655_v62 = vmax.f32 %v1613_v63, %v623_v18  ;;  %v609_v34 = vmin.f32 %v545_v59, %v573_v2  ;;  %v639_v13 = vmin.f32 %v1613_v63, %v623_v18 }
 0x13a   :  { %704 = vst.msk [vmem:[%s1485_s1 + $0x40] sm:$0xff] %vm694_vm0, %v686_v1  ;;  %v672_v33 = vmin.f32 %v656_v52, %v1325_v51  ;;  %v626_v8 = vmax.f32 %v530_v3, %v610_v27  ;;  %v450_v51 = vmin.f32 %v1622_v56, %v1619_v35  ;;  %v532_v9 = vmin.f32 %v1615_v46, %v1614_v6  ;;  %v1632_v3 = vld [vmem:[#allocation27_spill] sm:$0xff]  ;;  %v1634_v52 = vld [vmem:[#allocation28_spill] sm:$0xff] }
 0x13b   :  { %703 = vst.msk [vmem:[%s1485_s1 + $0x38] sm:$0x3f] %vm696_vm1, %v685_v58  ;;  %v671_v26 = vmin.f32 %v655_v62, %v1618_v15  ;;  %v625_v28 = vmax.f32 %v529_v41, %v609_v34  ;;  %v579_v55 = vpop.permute.xlu1 %578  ;;  %v549_v37 = vmax.f32 %v1628_v50, %v1627_v38  ;;  %v533_v42 = vmin.f32 %v1628_v50, %v1627_v38  ;;  %v1635_v46 = vld [vmem:[#allocation15_spill] sm:$0xff] }
 0x13c   :  { %v688_v54 = vmax.f32 %v640_v60, %v672_v33  ;;  %v658_v4 = vmax.f32 %v1623_v61, %v626_v8  ;;  %v577_v36 = vpop.permute.xlu0 %576  ;;  %v612_v22 = vmin.f32 %v548_v12, %v579_v55  ;;  %v642_v24 = vmin.f32 %v1623_v61, %v626_v8  ;;  %v1636_v60 = vld [vmem:[#allocation19_spill] sm:$0xff] }
 0x13d   :  { %v687_v20 = vmax.f32 %v639_v13, %v671_v26  ;;  %v657_v25 = vmax.f32 %v1624_v5, %v625_v28  ;;  %v611_v47 = vmin.f32 %v547_v53, %v577_v36  ;;  %v641_v44 = vmin.f32 %v1624_v5, %v625_v28 }
 0x13e   :  { %706 = vst.msk [vmem:[%s1485_s1 + $0x50] sm:$0xff] %vm694_vm0, %v688_v54  ;;  %v674_v17 = vmin.f32 %v658_v4, %v450_v51  ;;  %v628_v32 = vmax.f32 %v532_v9, %v612_v22  ;;  %v389_v1 = vmin.f32 %v1632_v3, %v1631_v43  ;;  %v388_v27 = vmin.f32 %v1634_v52, %v1633_v0 }
 0x13f   :  { %705 = vst.msk [vmem:[%s1485_s1 + $0x48] sm:$0x3f] %vm696_vm1, %v687_v20  ;;  %v673_v19 = vmin.f32 %v657_v25, %v1629_v30  ;;  %v627_v49 = vmax.f32 %v531_v7, %v611_v47  ;;  %v417_v48 = vpop.permute.xlu1 %416 }
 0x140   :  { %v690_v29 = vmax.f32 %v642_v24, %v674_v17  ;;  %v451_v31 = vmin.f32 %v387_v57, %v417_v48  ;;  %v581_v21 = vpop.permute.xlu0 %580  ;;  %v660_v33 = vmax.f32 %v1636_v60, %v628_v32  ;;  %v644_v16 = vmin.f32 %v1636_v60, %v628_v32 }
 0x141   :  { %v689_v59 = vmax.f32 %v641_v44, %v673_v19  ;;  %v659_v40 = vmax.f32 %v1630_v11, %v627_v49  ;;  %v613_v18 = vmin.f32 %v549_v37, %v581_v21  ;;  %v643_v2 = vmin.f32 %v1630_v11, %v627_v49 }
 0x142   :  { %708 = vst.msk [vmem:[%s1485_s1 + $0x60] sm:$0xff] %vm694_vm0, %v690_v29 }
 0x143   :  { %707 = vst.msk [vmem:[%s1485_s1 + $0x58] sm:$0x3f] %vm696_vm1, %v689_v59  ;;  %v675_v41 = vmin.f32 %v659_v40, %v451_v31  ;;  %v629_v58 = vmax.f32 %v533_v42, %v613_v18  ;;  %v421_v63 = vpop.permute.xlu1 %420 }
 0x144   :  { %v453_v62 = vmin.f32 %v389_v1, %v421_v63  ;;  %v419_v34 = vpop.permute.xlu0 %418 }
 0x145   :  { %v691_v6 = vmax.f32 %v643_v2, %v675_v41  ;;  %v661_v12 = vmax.f32 %v1635_v46, %v629_v58  ;;  %v452_v8 = vmin.f32 %v388_v27, %v419_v34  ;;  %v645_v14 = vmin.f32 %v1635_v46, %v629_v58 }
 0x147   :  { %709 = vst.msk [vmem:[%s1485_s1 + $0x68] sm:$0x3f] %vm696_vm1, %v691_v6  ;;  %v677_v53 = vmin.f32 %v661_v12, %v453_v62  ;;  %v676_v13 = vmin.f32 %v660_v33, %v452_v8 }
 0x149   :  { %v693_v15 = vmax.f32 %v645_v14, %v677_v53  ;;  %v692_v26 = vmax.f32 %v644_v16, %v676_v13 }
 0x14b   :  { %711 = vst.msk [vmem:[%s1485_s1 + $0x78] sm:$0x3f] %vm696_vm1, %v693_v15 }
 0x14c   :  { %710 = vst.msk [vmem:[%s1485_s1 + $0x70] sm:$0xff] %vm694_vm0, %v692_v26 }
 0x14d   :  { %716 = vsyncpa [#allocation3], 1 }

</bundles_post_ra>
